<compile_context>
chip_gen: v7x
topology: tpu7x:2x2x1
jax: 0.10.0
libtpu: 0.0.40
codegen_flags: <defaults>
</compile_context>

<pallas_src>
import jax
import jax.numpy as jnp
from jax.experimental import pallas as pl
from jax.experimental.pallas import tpu as pltpu


def _ceil_to(x, m):
    return ((x + m - 1) // m) * m


def _vmem_capacity_bytes():
    try:
        cap = getattr(pltpu.get_tpu_info(), "vmem_capacity_bytes", None)
        if cap:
            return int(cap)
    except Exception:
        pass
    return 64 * 1024 * 1024  # conservative: v7x physical VMEM per TensorCore


def _tree_add(parts):
    # Pairwise tree-add a list of equal-shaped arrays (better ILP than a chain).
    while len(parts) > 1:
        nxt = [parts[i] + parts[i + 1] for i in range(0, len(parts) - 1, 2)]
        if len(parts) % 2:
            nxt.append(parts[-1])
        parts = nxt
    return parts[0]


def lm_nll_kernel(inp_ref, tgt_ref, mask_ref, out_ref, acc_ref):
    """One (row_tile, vocab_tile) grid step.

    inp_ref : (tBT, tV)  log-probs, caller dtype (bf16 ok)
    tgt_ref : (tBT, 1)   int32 targets   (vocab-invariant -> resident block)
    mask_ref: (tBT, 1)   f32 mask        (vocab-invariant -> resident block)
    out_ref : (tBT, 1)   f32 per-row  -logp * mask  (written only at v == last)
    acc_ref : (tBT, 128) f32 lane-partial accumulator scratch
    """
    v = pl.program_id(1)
    tv = inp_ref.shape[-1]

    @pl.when(v == 0)
    def _init():
        acc_ref[...] = jnp.zeros_like(acc_ref)

    x = inp_ref[...]                                    # (tBT, tV)
    # Fold the vocab-tile offset into the tiny target column instead of adding
    # v*tV to a full-tile iota (saves one full-tile VALU pass per step).
    local_tgt = tgt_ref[...] - v * tv                   # (tBT, 1)
    ids = jax.lax.broadcasted_iota(jnp.int32, x.shape, 1)
    # Select-sum gather: at most one nonzero per row over the whole vocab, so
    # per-tile partials accumulated across tiles are exact.  The select (not a
    # multiply) also neutralizes any garbage / NaN read from ragged OOB edges.
    sel = jnp.where(ids == local_tgt, x, jnp.zeros_like(x))

    # Lane-partial accumulation: pure VALU adds of lane-aligned 128-wide slabs.
    # The single 128->1 cross-lane (XLU) reduce is deferred to the finalize
    # step, keeping the XLU and the narrow out block off the per-step path.
    parts = [sel[:, c * 128:(c + 1) * 128].astype(jnp.float32)
             for c in range(tv // 128)]
    acc_ref[...] += _tree_add(parts)

    @pl.when(v == pl.num_programs(1) - 1)
    def _finalize():
        row = jnp.sum(acc_ref[...], axis=-1, keepdims=True)   # (tBT, 1), one XLU reduce
        out_ref[...] = -row * mask_ref[...]


def language_model_criterion(inp, target, mask, *, block_bt=1024, block_v=4096):
    """Pallas equivalent of LanguageModelCriterion.forward."""
    B, T, V = inp.shape
    BT = B * T

    tgt = target[:, :T].astype(jnp.int32).reshape(BT, 1)
    msk = mask[:, :T].astype(jnp.float32).reshape(BT, 1)
    den = jnp.sum(msk)              # NaN for all-zero mask, matching the reference

    x2 = inp.reshape(BT, V)         # keep caller dtype (bf16 streams half the bytes)

    # Degenerate tiny-dim cases only: pad up to one hardware min-tile.  Real
    # shapes (BT >= 8, V >= 128) take the zero-copy path (no big-tensor pad).
    if V < 128:
        x2 = jnp.pad(x2, ((0, 0), (0, 128 - V)))
    V_in = max(V, 128)
    if BT < 8:
        x2 = jnp.pad(x2, ((0, 8 - BT), (0, 0)))
    BT_in = max(BT, 8)

    # Tile sizes: lane/sublane aligned, never exceeding the array extent, so the
    # grid only produces ordinary ragged last blocks (handled OOB by Pallas).
    tV = min(_ceil_to(block_v, 128), (V_in // 128) * 128)
    tBT = min(_ceil_to(block_bt, 8), (BT_in // 8) * 8)
    # Prefer >= 2 row blocks so the "parallel" bt axis can feed both TCs (v7x).
    tBT = min(tBT, max(8, _ceil_to(pl.cdiv(BT_in, 2), 8)))

    n_bt = pl.cdiv(BT_in, tBT)
    n_v = pl.cdiv(V_in, tV)
    BT_out = n_bt * tBT

    # Pad only the tiny per-row arrays.  Target pad value -1 guarantees padded /
    # out-of-bounds rows can never select anything; mask 0 zeroes them anyway.
    if BT_out != BT:
        tgt = jnp.pad(tgt, ((0, BT_out - BT), (0, 0)), constant_values=-1)
        msk = jnp.pad(msk, ((0, BT_out - BT), (0, 0)))

    itemsize = jnp.dtype(x2.dtype).itemsize
    tile_bytes = tBT * tV * itemsize
    # 3-deep input pipelining only when tiles are small and the vocab grid is
    # long enough to benefit; 2-deep for big (>=8 MiB) tiles (v7x VMEM budget).
    n_buf = 3 if (tile_bytes <= (8 << 20) and n_v >= 4) else 2

    # Honest VMEM budget: pipelined input buffers + lane-padded small blocks +
    # accumulator scratch + headroom for compiler temporaries, capped below the
    # physical per-core VMEM of the current generation.
    vmem_cap = _vmem_capacity_bytes()
    small_bytes = 7 * tBT * 128 * 4          # tgt/mask/out (x2 buffers) + acc scratch
    headroom = max(8 << 20, 2 * tile_bytes + (4 << 20))
    vmem_limit = int(min((vmem_cap * 7) // 8,
                         max(32 << 20, n_buf * tile_bytes + small_bytes + headroom)))

    cost = pl.CostEstimate(
        flops=2 * BT_in * V_in,
        transcendentals=0,
        bytes_accessed=BT_in * V_in * itemsize + BT_out * (4 + 4 + 4),
    )

    lp_index = lambda i, v: (i, v)
    lp_spec = pl.BlockSpec((tBT, tV), lp_index)
    if n_buf != 2:
        try:
            lp_spec = pl.BlockSpec((tBT, tV), lp_index,
                                   pipeline_mode=pl.Buffered(n_buf))
        except Exception:
            lp_spec = pl.BlockSpec((tBT, tV), lp_index)

    per_row = pl.pallas_call(
        lm_nll_kernel,
        out_shape=jax.ShapeDtypeStruct((BT_out, 1), jnp.float32),
        grid_spec=pltpu.PrefetchScalarGridSpec(
            num_scalar_prefetch=0,
            grid=(n_bt, n_v),                                  # vocab innermost
            in_specs=[
                lp_spec,                                       # log-probs
                pl.BlockSpec((tBT, 1), lambda i, v: (i, 0)),   # target (v-invariant)
                pl.BlockSpec((tBT, 1), lambda i, v: (i, 0)),   # mask   (v-invariant)
            ],
            out_specs=pl.BlockSpec((tBT, 1), lambda i, v: (i, 0)),
            scratch_shapes=[pltpu.VMEM((tBT, 128), jnp.float32)],
        ),
        compiler_params=pltpu.CompilerParams(
            dimension_semantics=("parallel", "arbitrary"),
            vmem_limit_bytes=vmem_limit,
        ),
        cost_estimate=cost,
    )(x2, tgt, msk)

    # Padded rows are exactly zero (target=-1 selects nothing, mask=0), so the
    # full sum equals the sum over the valid BT rows.
    num = jnp.sum(per_row)
    return num / den


def _reference(inp, target, mask):
    T = inp.shape[1]
    target = target[:, :T].astype(jnp.int32)
    mask = mask[:, :T].astype(jnp.float32)
    gathered = jnp.take_along_axis(inp, target[:, :, None], axis=2)[..., 0]
    return jnp.sum(-gathered * mask) / jnp.sum(mask)


if __name__ == "__main__":
    key = jax.random.PRNGKey(0)

    # --- Test 1: toy shapes, default blocks (tiny-V pad path, 2 row blocks) ---
    B, T, T_full, V = 2, 8, 10, 32
    k1, k2, _ = jax.random.split(key, 3)
    logprobs = jax.nn.log_softmax(
        jax.random.normal(k1, (B, T, V), dtype=jnp.float32), axis=-1)
    target = jax.random.randint(k2, (B, T_full), 0, V, dtype=jnp.int32)
    lengths = jnp.array([6, 8], dtype=jnp.int32)
    mask = (jnp.arange(T_full)[None, :] < lengths[:, None]).astype(jnp.float32)

    out = jax.block_until_ready(language_model_criterion(logprobs, target, mask))
    ref = _reference(logprobs, target, mask)
    assert jnp.allclose(out, ref, atol=1e-5, rtol=1e-5), (out, ref)

    # --- Test 2: multi-tile ragged grid in BOTH axes (no big-tensor pad) ------
    B2, T2, T2_full, V2 = 2, 40, 48, 300
    k3, k4, _ = jax.random.split(jax.random.PRNGKey(1), 3)
    lp2 = jax.nn.log_softmax(
        jax.random.normal(k3, (B2, T2, V2), dtype=jnp.float32), axis=-1)
    tgt2 = jax.random.randint(k4, (B2, T2_full), 0, V2, dtype=jnp.int32)
    len2 = jnp.array([33, 40], dtype=jnp.int32)
    msk2 = (jnp.arange(T2_full)[None, :] < len2[:, None]).astype(jnp.float32)

    out2 = jax.block_until_ready(
        language_model_criterion(lp2, tgt2, msk2, block_bt=32, block_v=128))
    ref2 = _reference(lp2, tgt2, msk2)
    assert jnp.allclose(out2, ref2, atol=1e-5, rtol=1e-5), (out2, ref2)

    # --- Test 3: bf16 pass-through, default blocks, ragged vocab edge ---------
    lp2_bf16 = lp2.astype(jnp.bfloat16)
    out3 = jax.block_until_ready(language_model_criterion(lp2_bf16, tgt2, msk2))
    ref3 = _reference(lp2_bf16, tgt2, msk2)
    assert jnp.allclose(out3, ref3, atol=1e-3, rtol=1e-3), (out3, ref3)

    print("KERNEL_OK")
</pallas_src>

<mosaic_0001>
module attributes {stable_mosaic.version = 11 : i64} {
  func.func @lm_nll_kernel(%arg0: i32, %arg1: i32, %arg2: memref<8x128xf32, #tpu.memory_space<vmem>>, %arg3: memref<8x1xi32, #tpu.memory_space<vmem>>, %arg4: memref<8x1xf32, #tpu.memory_space<vmem>>, %arg5: memref<8x1xf32, #tpu.memory_space<vmem>>, %arg6: memref<8x128xf32, #tpu.memory_space<vmem>>) attributes {dimension_semantics = [#tpu.dimension_semantics<parallel>, #tpu.dimension_semantics<arbitrary>], iteration_bounds = array<i64: 2, 1>, scalar_prefetch = 0 : i64, scratch_operands = 1 : i64, tpu.core_type = #tpu.core_type<tc>, window_params = [{transform_indices = @transform_0, window_bounds = array<i64: 8, 128>}, {transform_indices = @transform_1, window_bounds = array<i64: 8, 1>}, {transform_indices = @transform_2, window_bounds = array<i64: 8, 1>}, {transform_indices = @transform_3, window_bounds = array<i64: 8, 1>}]} {
    %c0_i32 = arith.constant 0 : i32
    %0 = arith.cmpi eq, %arg1, %c0_i32 : i32
    %1 = arith.extui %0 : i1 to i32
    %c0_i32_0 = arith.constant 0 : i32
    %2 = arith.cmpi ne, %1, %c0_i32_0 : i32
    scf.if %2 {
      %cst_10 = arith.constant 0.000000e+00 : f32
      %19 = vector.broadcast %cst_10 : f32 to vector<8x128xf32>
      %c0_11 = arith.constant 0 : index
      %c0_12 = arith.constant 0 : index
      %20 = vector.load %arg6[%c0_11, %c0_12] : memref<8x128xf32, #tpu.memory_space<vmem>>, vector<8x128xf32>
      tpu.vector_store %arg6[%c0_11, %c0_12], %19 {strides = array<i32>} : memref<8x128xf32, #tpu.memory_space<vmem>>, vector<8x128xf32>,
    } else {
    }
    %c0 = arith.constant 0 : index
    %c0_1 = arith.constant 0 : index
    %3 = vector.load %arg2[%c0, %c0_1] : memref<8x128xf32, #tpu.memory_space<vmem>>, vector<8x128xf32>
    %c0_2 = arith.constant 0 : index
    %c0_3 = arith.constant 0 : index
    %4 = vector.load %arg3[%c0_2, %c0_3] : memref<8x1xi32, #tpu.memory_space<vmem>>, vector<8x1xi32>
    %c128_i32 = arith.constant 128 : i32
    %5 = arith.muli %arg1, %c128_i32 : i32
    %6 = vector.broadcast %5 : i32 to vector<8x1xi32>
    %7 = arith.subi %4, %6 : vector<8x1xi32>
    %8 = tpu.iota {dimensions = array<i32: 1>} : vector<8x128xi32>
    %9 = vector.broadcast %7 : vector<8x1xi32> to vector<8x128xi32>
    %10 = arith.cmpi eq, %8, %9 : vector<8x128xi32>
    %cst = arith.constant 0.000000e+00 : f32
    %11 = vector.broadcast %cst : f32 to vector<8x128xf32>
    %12 = arith.select %10, %3, %11 : vector<8x128xi1>, vector<8x128xf32>
    %c0_4 = arith.constant 0 : index
    %c0_5 = arith.constant 0 : index
    %13 = vector.load %arg6[%c0_4, %c0_5] : memref<8x128xf32, #tpu.memory_space<vmem>>, vector<8x128xf32>
    %14 = arith.addf %13, %12 : vector<8x128xf32>
    %c0_6 = arith.constant 0 : index
    %c0_7 = arith.constant 0 : index
    %15 = vector.load %arg6[%c0_6, %c0_7] : memref<8x128xf32, #tpu.memory_space<vmem>>, vector<8x128xf32>
    tpu.vector_store %arg6[%c0_6, %c0_7], %14 {strides = array<i32>} : memref<8x128xf32, #tpu.memory_space<vmem>>, vector<8x128xf32>,
    %c0_i32_8 = arith.constant 0 : i32
    %16 = arith.cmpi eq, %arg1, %c0_i32_8 : i32
    %17 = arith.extui %16 : i1 to i32
    %c0_i32_9 = arith.constant 0 : i32
    %18 = arith.cmpi ne, %17, %c0_i32_9 : i32
    scf.if %18 {
      %c0_10 = arith.constant 0 : index
      %c0_11 = arith.constant 0 : index
      %19 = vector.load %arg6[%c0_10, %c0_11] : memref<8x128xf32, #tpu.memory_space<vmem>>, vector<8x128xf32>
      %cst_12 = arith.constant dense<0.000000e+00> : vector<8xf32>
      %20 = vector.multi_reduction <add>, %19, %cst_12 [1] : vector<8x128xf32> to vector<8xf32>
      %21 = vector.shape_cast %20 : vector<8xf32> to vector<8x1xf32>
      %cst_13 = arith.constant 0.000000e+00 : f32
      %22 = vector.broadcast %cst_13 : f32 to vector<8x1xf32>
      %23 = arith.subf %22, %21 : vector<8x1xf32>
      %c0_14 = arith.constant 0 : index
      %c0_15 = arith.constant 0 : index
      %24 = vector.load %arg4[%c0_14, %c0_15] : memref<8x1xf32, #tpu.memory_space<vmem>>, vector<8x1xf32>
      %25 = arith.mulf %23, %24 : vector<8x1xf32>
      %c0_16 = arith.constant 0 : index
      %c0_17 = arith.constant 0 : index
      %26 = vector.load %arg5[%c0_16, %c0_17] : memref<8x1xf32, #tpu.memory_space<vmem>>, vector<8x1xf32>
      tpu.vector_store %arg5[%c0_16, %c0_17], %25 {strides = array<i32>} : memref<8x1xf32, #tpu.memory_space<vmem>>, vector<8x1xf32>,
    } else {
    }
    return
  }
  func.func @transform_0(%arg0: i32, %arg1: i32) -> (i32, i32) {
    %c0_i32 = arith.constant 0 : i32
    return %arg0, %arg1 : i32, i32
  }
  func.func @transform_1(%arg0: i32, %arg1: i32) -> (i32, i32) {
    %c0_i32 = arith.constant 0 : i32
    %c0_i32_0 = arith.constant 0 : i32
    return %arg0, %c0_i32 : i32, i32
  }
  func.func @transform_2(%arg0: i32, %arg1: i32) -> (i32, i32) {
    %c0_i32 = arith.constant 0 : i32
    %c0_i32_0 = arith.constant 0 : i32
    return %arg0, %c0_i32 : i32, i32
  }
  func.func @transform_3(%arg0: i32, %arg1: i32) -> (i32, i32) {
    %c0_i32 = arith.constant 0 : i32
    %c0_i32_0 = arith.constant 0 : i32
    return %arg0, %c0_i32 : i32, i32
  }
}

</mosaic_0001>

<bundles_post_ra>
// kernel: tpu_custom_call.1
= control target key start
LH: loop header
LB: loop body
LE: loop exit
PB: predicated region body
PF: predicated region fallthrough
CT: control target
= control target key end

     0   :  { %s424_s12 = smov 0   ;;  %s426_s13 = smov 0   ;;  %s463_s0 = inlined_call_operand.vmem [shape: f32[16,128], index: 0, kind: input, shape index: {}]   ;;  %s464_s1 = inlined_call_operand.vmem [shape: s32[16,1], index: 1, kind: input, shape index: {}]   ;;  %s465_s2 = inlined_call_operand.vmem [shape: f32[16,1], index: 2, kind: input, shape index: {}]   ;;  %s466_s3 = inlined_call_operand.vmem [shape: f32[16,1], index: 3, kind: output, shape index: {}]  }
   0x1   :  { %s428_s14 = smov 0  }
   0x2 LB: > { %s25_s15 = sadd.s32 1, %s397_s13  ;;  %p346_p0 = scmp.ge.s32.totalorder %s401_s14, 1  ;;  %s401_s14 = sphi %s428_s14, %s13_s14   ;;  %s397_s13 = sphi %s426_s13, %s468_s13   ;;  %s393_s12 = sphi %s424_s12, %s467_s12  }
   0x3   : > { %p27_p1 = scmp.ge.s32.totalorder %s25_s15, 2  ;;  %p171_p2 = scmp.lt.s32.totalorder %s401_s14, 3 }
   0x5   : > { %s470_s15 = smov (%p27_p1, %s25_s15), 0  ;;  %p172_p3 = pnand %p346_p0, %p171_p2 }
   0x6   : > { %p204_p4 = scmp.lt.s32.totalorder (!%p172_p3), %s393_s12, 1  ;;  %v403_v0 = vmov (!%p172_p3), 0   ;;  %v233_v2 = vlaneseq (!%p172_p3)  ;;  %vm252_vm1 = vcmask (!%p172_p3), 7168  }
   0x7   : > { %175 = sbr.rel (%p172_p3) target bundleno = 295 (0x127), region = 32  ;;  %378 = vset.pattern.permute.xlu0 (!%p172_p3), %v403_v0 }
   0x8   : > { %v234_v3 = vand.u32 (!%p172_p3), 127, %v233_v2 }
   0xe   : > { %s472_s12 = smov (!%p204_p4, %s393_s12), 1 }
   0xf   : > { %s347_s16 = sshll.u32 %s472_s12, 3 }
  0x10   : > { %s214_s19 = scalar_lea.vmem %s464_s1, %s347_s16  ;;  %s210_s22 = scalar_lea.vmem %s463_s0, %s347_s16 }
  0x11   : > { %v229_v1 = vld [vmem:[%s214_s19] sm:$0xff]  ;;  %s218_s25 = scalar_lea.vmem %s465_s2, %s347_s16  ;;  %s222_s28 = scalar_lea.vmem %s466_s3, %s347_s16 }
  0x12   : > { %236 = vperm.xlu0 %378, %v229_v1   ;;  %v228_v4 = vld [vmem:[%s210_s22] sm:$0xff] }
  0x13   : > { %v250_v7 = vld [vmem:[%s218_s25] sm:$0xff] }
  0x91   : > { %v237_v5 = vpop.permute.xlu0 %236 }
  0x92   : > { %vm238_vm0 = vcmp.eq.s32.totalorder %v234_v3, %v237_v5 }
  0x93   : > { %v239_v6 = vsel %vm238_vm0, %v228_v4, 0.0 }
  0x94   : > { %247 = vadd.xlane.f32.xlu0 %v239_v6 }
 0x121   : > { %v248_v8 = vpop.xlane.xlu0 %247 }
 0x122   : > { %v249_v9 = vsub.f32 0.0, %v248_v8 }
 0x124   : > { %v251_v10 = vmul.f32 %v250_v7, %v249_v9 }
 0x126   : > { %253 = vst.msk [vmem:[%s222_s28] sm:$0xff] %vm252_vm1, %v251_v10 }
 0x127 PF: > { %s13_s14 = sadd.s32 1, %s401_s14   ;;  %s467_s12 = smov %s397_s13 }
 0x128   : > { %p10_p5 = scmp.ge.s32.totalorder %s13_s14, 4   ;;  %s468_s13 = smov %s470_s15 }
 0x12a   :  { %12 = sbr.rel (!%p10_p5) target bundleno = 2 (0x2), region = 76 }

</bundles_post_ra>
